<compile_context>
chip_gen: v5e
topology: v5e:2x2
jax: 0.10.0
libtpu: 0.0.40
codegen_flags: <defaults>
</compile_context>

<pallas_src>
import math

import jax
import jax.numpy as jnp
from jax.experimental import pallas as pl
from jax.experimental.pallas import tpu as pltpu


# ---------------------------------------------------------------------------
# Noise schedule (module __init__ buffers), plain JAX setup glue.
# ---------------------------------------------------------------------------
def make_schedule(timesteps=1000, scale=1, beta_start=1e-4, beta_end=0.02):
    beta = jnp.linspace(scale * beta_start, scale * beta_end, timesteps,
                        dtype=jnp.float32)
    alpha = 1.0 - beta
    alpha_bar = jnp.cumprod(alpha, axis=0)
    return {
        "beta": beta,
        "alpha": alpha,
        "alpha_bar": alpha_bar,
        "sqrt_alpha_bar": jnp.sqrt(alpha_bar),
        "one_by_sqrt_alpha": 1.0 / jnp.sqrt(alpha),
        "sqrt_one_minus_alpha_bar": jnp.sqrt(1.0 - alpha_bar),
    }


def _sublane(dtype):
    """Sublane packing granularity for a dtype: f32 -> 8, bf16 -> 16, int8 -> 32."""
    return max(8, 32 // jnp.dtype(dtype).itemsize)


def _choose_row_tile(rows, batch, align=8, max_tile=4096, min_total_steps=4):
    """Pick a row-tile size.

    * multiple of `align` unless it equals `rows` (a full-extent block is
      always legal), so no wrapper-side padding is ever materialized;
    * at most `max_tile` rows (VMEM budget: 3 streams x 2 buffers);
    * small enough that batch * num_row_tiles >= min_total_steps when the
      input permits it (keeps both v7x TensorCores streaming at small batch).
    """
    max_tile = max(align, (max_tile // align) * align)
    target_tiles = -(-min_total_steps // max(batch, 1))   # ceil
    tile = -(-rows // target_tiles)                        # ceil
    tile = min(tile, max_tile)
    if tile < rows:
        tile = -(-tile // align) * align                   # (sublane,128) alignment
    if tile >= rows and rows <= max_tile:
        return rows                                        # single full-extent block
    return min(tile, max_tile)


# ---------------------------------------------------------------------------
# Pallas kernel: per-batch scalar AXPBY (purely HBM-bandwidth bound).
# ---------------------------------------------------------------------------
def _forward_sample_kernel(sab_ref, somab_ref, t_ref, x_ref, eps_ref, out_ref):
    b = pl.program_id(0)
    t = t_ref[b]                       # timesteps[b]                       (SMEM)
    a = sab_ref[t]                     # sqrt_alpha_bar[t]                  (SMEM)
    s = somab_ref[t]                   # sqrt_one_minus_alpha_bar[t]        (SMEM)
    x = x_ref[...].astype(jnp.float32)
    e = eps_ref[...].astype(jnp.float32)
    out_ref[...] = (a * x + s * e).astype(out_ref.dtype)


def forward_sampler(x0, timesteps, schedule, key, *,
                    out_dtype=None, max_row_tile=4096, donate_x0=False):
    """JAX/Pallas equivalent of ForwardSampler.forward.

    x0:        (B, ...) float array (e.g. (B, C, F, H, W))
    timesteps: (B,) int32 indices into the schedule
    Returns (sample, epsilon), epsilon drawn with jax.random (randn_like).
    """
    out_dtype = jnp.dtype(x0.dtype if out_dtype is None else out_dtype)
    B = x0.shape[0]
    n = math.prod(x0.shape[1:])

    # epsilon ~ N(0,1), same semantics as torch.randn_like(x0).
    epsilon = jax.random.normal(key, x0.shape, dtype=x0.dtype)

    # Lane-dense view: (B, rows, 128) when possible; otherwise one full row per
    # batch (full-extent block, always legal — may be VMEM-heavy for huge n).
    lane = 128 if n % 128 == 0 else n
    rows = n // lane
    align = max(_sublane(x0.dtype), _sublane(out_dtype))
    tile_r = _choose_row_tile(rows, B, align=align, max_tile=max_row_tile)
    num_r = pl.cdiv(rows, tile_r)

    sab = schedule["sqrt_alpha_bar"].astype(jnp.float32)          # (T,) -> SMEM
    somab = schedule["sqrt_one_minus_alpha_bar"].astype(jnp.float32)
    t = timesteps.astype(jnp.int32)

    x_flat = x0.reshape(B, rows, lane)
    eps_flat = epsilon.reshape(B, rows, lane)

    block = (None, tile_r, lane)                 # batch dim squeezed in-kernel
    idx = lambda b, r, *_: (b, r, 0)             # prefetch refs trail positionally

    # VMEM budget: 3 streams (x, eps, sample) x 2 pipeline buffers per step.
    per_step = tile_r * lane * (2 * jnp.dtype(x0.dtype).itemsize
                                + out_dtype.itemsize)
    vmem_limit = int(min(48 * 1024 * 1024,
                         max(32 * 1024 * 1024, 2 * per_step + (2 << 20))))

    io_aliases = {}
    if donate_x0 and out_dtype == x0.dtype:
        io_aliases = {3: 0}                      # alias x_flat -> sample output

    grid_spec = pltpu.PrefetchScalarGridSpec(
        num_scalar_prefetch=3,                   # sab table, somab table, timesteps
        grid=(B, num_r),
        in_specs=[
            pl.BlockSpec(block, idx),            # x0
            pl.BlockSpec(block, idx),            # epsilon
        ],
        out_specs=pl.BlockSpec(block, idx),      # sample
    )

    sample_flat = pl.pallas_call(
        _forward_sample_kernel,
        out_shape=jax.ShapeDtypeStruct((B, rows, lane), out_dtype),
        grid_spec=grid_spec,
        compiler_params=pltpu.CompilerParams(
            dimension_semantics=("parallel", "parallel"),
            vmem_limit_bytes=vmem_limit),
        input_output_aliases=io_aliases,
    )(sab, somab, t, x_flat, eps_flat)

    return sample_flat.reshape(x0.shape), epsilon


# ---------------------------------------------------------------------------
# Demo / self-check
# ---------------------------------------------------------------------------
if __name__ == "__main__":
    key = jax.random.PRNGKey(0)
    k_x, k_t, k_eps = jax.random.split(key, 3)

    # Small 5-D input (B, C, F, H, W) consistent with reshape(-1, 1, 1, 1, 1).
    B, C, F, H, W = 2, 4, 8, 16, 16
    x0 = jax.random.normal(k_x, (B, C, F, H, W), dtype=jnp.float32)
    timesteps = jax.random.randint(k_t, (B,), 0, 1000, dtype=jnp.int32)

    schedule = make_schedule(timesteps=1000, scale=1,
                             beta_start=1e-4, beta_end=0.02)

    sample, epsilon = forward_sampler(x0, timesteps, schedule, k_eps)
    sample = jax.block_until_ready(sample)
    epsilon = jax.block_until_ready(epsilon)

    assert sample.shape == x0.shape and epsilon.shape == x0.shape

    # Reference: module semantics with the same epsilon.
    sab = schedule["sqrt_alpha_bar"][timesteps].reshape(-1, 1, 1, 1, 1)
    somab = schedule["sqrt_one_minus_alpha_bar"][timesteps].reshape(-1, 1, 1, 1, 1)
    ref = sab * x0 + somab * epsilon
    assert jnp.allclose(sample, ref, atol=1e-5, rtol=1e-5), \
        float(jnp.max(jnp.abs(sample - ref)))

    # epsilon ~ N(0, 1): loose moment check.
    mu = float(jnp.mean(epsilon))
    sd = float(jnp.std(epsilon))
    assert abs(mu) < 0.1 and 0.8 < sd < 1.2, (mu, sd)

    print("KERNEL_OK")
</pallas_src>

<mosaic_0001>
module attributes {stable_mosaic.version = 11 : i64} {
  func.func @_forward_sample_kernel(%arg0: i32, %arg1: i32, %arg2: memref<1000xf32, #tpu.memory_space<smem>>, %arg3: memref<1000xf32, #tpu.memory_space<smem>>, %arg4: memref<2xi32, #tpu.memory_space<smem>>, %arg5: memref<1x32x128xf32, #tpu.memory_space<vmem>>, %arg6: memref<1x32x128xf32, #tpu.memory_space<vmem>>, %arg7: memref<1x32x128xf32, #tpu.memory_space<vmem>>) attributes {dimension_semantics = [#tpu.dimension_semantics<parallel>, #tpu.dimension_semantics<parallel>], iteration_bounds = array<i64: 2, 2>, scalar_prefetch = 3 : i64, scratch_operands = 0 : i64, tpu.core_type = #tpu.core_type<tc>, window_params = [{transform_indices = @transform_0, window_bounds = array<i64: 1, 32, 128>}, {transform_indices = @transform_1, window_bounds = array<i64: 1, 32, 128>}, {transform_indices = @transform_2, window_bounds = array<i64: 1, 32, 128>}]} {
    %0 = arith.index_cast %arg0 : i32 to index
    %1 = memref.load %arg4[%0] : memref<2xi32, #tpu.memory_space<smem>>
    %2 = arith.index_cast %1 : i32 to index
    %3 = memref.load %arg2[%2] : memref<1000xf32, #tpu.memory_space<smem>>
    %4 = arith.index_cast %1 : i32 to index
    %5 = memref.load %arg3[%4] : memref<1000xf32, #tpu.memory_space<smem>>
    %c0 = arith.constant 0 : index
    %c0_0 = arith.constant 0 : index
    %c0_1 = arith.constant 0 : index
    %6 = vector.load %arg5[%c0, %c0_0, %c0_1] : memref<1x32x128xf32, #tpu.memory_space<vmem>>, vector<1x32x128xf32>
    %7 = vector.shape_cast %6 : vector<1x32x128xf32> to vector<32x128xf32>
    %c0_2 = arith.constant 0 : index
    %c0_3 = arith.constant 0 : index
    %c0_4 = arith.constant 0 : index
    %8 = vector.load %arg6[%c0_2, %c0_3, %c0_4] : memref<1x32x128xf32, #tpu.memory_space<vmem>>, vector<1x32x128xf32>
    %9 = vector.shape_cast %8 : vector<1x32x128xf32> to vector<32x128xf32>
    %10 = vector.broadcast %3 : f32 to vector<32x128xf32>
    %11 = arith.mulf %10, %7 : vector<32x128xf32>
    %12 = vector.broadcast %5 : f32 to vector<32x128xf32>
    %13 = arith.mulf %12, %9 : vector<32x128xf32>
    %14 = arith.addf %11, %13 : vector<32x128xf32>
    %c0_5 = arith.constant 0 : index
    %c0_6 = arith.constant 0 : index
    %c0_7 = arith.constant 0 : index
    %15 = vector.load %arg7[%c0_5, %c0_6, %c0_7] : memref<1x32x128xf32, #tpu.memory_space<vmem>>, vector<1x32x128xf32>
    %16 = vector.shape_cast %15 : vector<1x32x128xf32> to vector<32x128xf32>
    %17 = vector.shape_cast %14 : vector<32x128xf32> to vector<1x32x128xf32>
    tpu.vector_store %arg7[%c0_5, %c0_6, %c0_7], %17 {strides = array<i32>} : memref<1x32x128xf32, #tpu.memory_space<vmem>>, vector<1x32x128xf32>,
    return
  }
  func.func @transform_0(%arg0: i32, %arg1: i32, %arg2: memref<1000xf32, #tpu.memory_space<smem>>, %arg3: memref<1000xf32, #tpu.memory_space<smem>>, %arg4: memref<2xi32, #tpu.memory_space<smem>>) -> (i32, i32, i32) {
    %c0_i32 = arith.constant 0 : i32
    %c0_i32_0 = arith.constant 0 : i32
    return %arg0, %arg1, %c0_i32 : i32, i32, i32
  }
  func.func @transform_1(%arg0: i32, %arg1: i32, %arg2: memref<1000xf32, #tpu.memory_space<smem>>, %arg3: memref<1000xf32, #tpu.memory_space<smem>>, %arg4: memref<2xi32, #tpu.memory_space<smem>>) -> (i32, i32, i32) {
    %c0_i32 = arith.constant 0 : i32
    %c0_i32_0 = arith.constant 0 : i32
    return %arg0, %arg1, %c0_i32 : i32, i32, i32
  }
  func.func @transform_2(%arg0: i32, %arg1: i32, %arg2: memref<1000xf32, #tpu.memory_space<smem>>, %arg3: memref<1000xf32, #tpu.memory_space<smem>>, %arg4: memref<2xi32, #tpu.memory_space<smem>>) -> (i32, i32, i32) {
    %c0_i32 = arith.constant 0 : i32
    %c0_i32_0 = arith.constant 0 : i32
    return %arg0, %arg1, %c0_i32 : i32, i32, i32
  }
}

</mosaic_0001>

<bundles_post_ra>
// kernel: tpu_custom_call.1
= control target key start
LH: loop header
LB: loop body
LE: loop exit
PB: predicated region body
PF: predicated region fallthrough
CT: control target
= control target key end

     0   :  { %s729_s24 = smov [#allocation3]   ;;  %s730_s25 = smov [#allocation4]   ;;  %s944_s0 = inlined_call_operand.hbm [shape: f32[1000], index: 0, kind: input, shape index: {}]   ;;  %s945_s3 = inlined_call_operand.hbm [shape: f32[2,64,128], index: 3, kind: input, shape index: {}]   ;;  %s946_s4 = inlined_call_operand.hbm [shape: f32[2,64,128], index: 4, kind: input, shape index: {}]   ;;  %s947_s5 = inlined_call_operand.hbm [shape: f32[2,64,128], index: 5, kind: output, shape index: {}]   ;;  %s948_s1 = inlined_call_operand.hbm [shape: f32[1000], index: 1, kind: input, shape index: {}]   ;;  %s949_s2 = inlined_call_operand.vmem [shape: s32[2], index: 2, kind: input, shape index: {}]  }
   0x1   :  { %952 = sst [smem:[#allocation18_spill]] %s945_s3  ;;  %s11_s20 = sshll.u32 %s944_s0, 4  ;;  %s12_s20 = int_to_ptr.hbm [resolvable:$true] %s11_s20 }
   0x2   :  { %s16_s23 = sshll.u32 %s948_s1, 4  ;;  %s21_s28 = sshll.u32 %s949_s2, 4  ;;  %s17_s23 = int_to_ptr.hbm [resolvable:$true] %s16_s23  ;;  %s22_s28 = int_to_ptr.vmem [resolvable:$true] %s21_s28 }
   0x3   :  { %14 = dma.hbm_to_smem %s12_s20, 128, %s729_s24, [#allocation2] }
   0x4   :  { %19 = dma.hbm_to_smem %s17_s23, 128, %s730_s25, [#allocation2] }
   0x5   :  { %s731_s29 = smov [#allocation5]  }
   0x6   :  { %24 = dma.vmem_to_smem %s22_s28, 16, %s731_s29, [#allocation2] }
   0x7   :  { %683 = dma.done.wait [#allocation2], 272 }
   0x8   :  { %684 = vsyncadd [#allocation2], 4294967024 }
   0x9   :  { %27 = sfence }
   0xa   :  { %28 = vsyncpa [#allocation7], 0 }
   0xb   :  { %30 = vsyncpa [#allocation7 + $0x1], 0 }
   0xc   :  { %31 = vsyncpa [#allocation10], 0 }
   0xd   :  { %33 = vsyncpa [#allocation10 + $0x1], 0 }
   0xe   :  { %34 = vsyncpa [#allocation8], 0 }
   0xf   :  { %36 = vsyncpa [#allocation8 + $0x1], 0  ;;  %s775_s0 = smov 0   ;;  %s777_s1 = smov 0  }
  0x10   :  { %s779_s30 = smov 0   ;;  %s781_s6 = smov 0  }
  0x11   :  { %s783_s2 = smov 0   ;;  %s785_s7 = smov 0  }
  0x12   :  { %s787_s8 = smov 0   ;;  %s789_s9 = smov 0  }
  0x13 LB: > { %s415_s10 = sadd.s32 4294967295, %s727_s9   ;;  %s416_s11 = sadd.s32 4294967294, %s727_s9   ;;  %s727_s9 = sphi %s789_s9, %s42_s9   ;;  %s723_s8 = sphi %s787_s8, %s969_s8   ;;  %s719_s7 = sphi %s785_s7, %s968_s7   ;;  %s715_s2 = sphi %s783_s2, %s967_s2   ;;  %s711_s6 = sphi %s781_s6, %s966_s6   ;;  %s707_s30 = sphi %s779_s30, %s965_s30   ;;  %s703_s1 = sphi %s777_s1, %s964_s1   ;;  %s699_s0 = sphi %s775_s0, %s963_s0  }
  0x14   : > { %s51_s12 = sadd.s32 1, %s719_s7  ;;  %s54_s13 = sadd.s32 1, %s723_s8 }
  0x15   : > { %p52_p0 = scmp.ge.s32.totalorder %s51_s12, 2  ;;  %s63_s14 = sadd.s32 1, %s707_s30 }
  0x16   : > { %p70_p1 = scmp.ne.s32.totalorder %s707_s30, %s703_s1  ;;  %p71_p2 = scmp.eq.s32.totalorder %s727_s9, 0 }
  0x17   : > { %s971_s12 = smov (%p52_p0, %s51_s12), 0  ;;  %s973_s13 = smov (!%p52_p0, %s54_s13), %s723_s8 }
  0x18   : > { %953 = sst [smem:[#allocation16_spill]] %s971_s12  ;;  %s59_s15 = ssub.s32 %s719_s7, %s971_s12 }
  0x19   : > { %p828_p3 = por %p71_p2, %p70_p1  ;;  %p56_p4 = scmp.ge.s32.totalorder %s973_s13, 2 }
  0x1a   : > { %p76_p5 = scmp.ne.s32.totalorder %s703_s1, %s699_s0  ;;  %p77_p6 = scmp.eq.s32.totalorder %s415_s10, 0 }
  0x1b   : > { %p130_p7 = scmp.eq.s32.totalorder %s415_s10, 3  ;;  %s975_s13 = smov (%p56_p4, %s973_s13), 0 }
  0x1c   : > { %955 = sst [smem:[#allocation17_spill]] %s975_s13  ;;  %p836_p8 = por %p77_p6, %p76_p5 }
  0x1d   : > { %p840_p9 = por %p130_p7, %p70_p1  ;;  %s58_s19 = ssub.s32 %s723_s8, %s975_s13 }
  0x1e   : > { %p136_p10 = scmp.eq.s32.totalorder %s416_s11, 3  ;;  %s60_s20 = sor.u32 %s59_s15, %s58_s19 }
  0x1f   : > { %p61_p11 = scmp.eq.s32.totalorder %s60_s20, 0  ;;  %p454_p13 = scmp.lt.s32.totalorder %s727_s9, 4 }
  0x20   : > { %p846_p12 = por %p136_p10, %p76_p5  ;;  %s852_s22 = sand.u32 1, %s707_s30  }
  0x21   : > { %s855_s23 = scalar_select %p61_p11, %s707_s30, %s63_s14  }
  0x22   : > { %s419_s24 = sshll.u32 %s852_s22, 5  ;;  %s420_s25 = sshll.u32 %s719_s7, 2 }
  0x23   : > { %s421_s26 = sshll.u32 %s723_s8, 3  ;;  %s160_s27 = scalar_lea.vmem [#allocation6], %s419_s24 }
  0x24   : > { %s170_s28 = sshll.u32 %s160_s27, 4  ;;  %s165_s29 = sadd.s32 %s421_s26, %s420_s25  ;;  %s171_s28 = int_to_ptr.vmem [resolvable:$true] %s170_s28 }
  0x25   : > { %s422_s10 = sshll.u32 %s165_s29, 3  ;;  %p862_p0 = pnand %p454_p13, %p828_p3 }
  0x26   : > { %s960_s3 = sld [smem:[#allocation18_spill]]  ;;  %s157_s13 = scalar_lea.sflag [#allocation7], %s852_s22 }
  0x27   : > { %s732_s12 = smov 128   ;;  %s733_s27 = smov 8  }
  0x28   : > { %p427_p1 = scmp.ge.s32.totalorder %s727_s9, 1  ;;  %p202_p2 = scmp.lt.s32.totalorder %s727_s9, 5 }
  0x29   : > { %s191_s26 = scalar_lea.hbm %s946_s4, %s422_s10  ;;  %s184_s15 = scalar_lea.vmem [#allocation9], %s419_s24 }
  0x2a   : > { %p203_p3 = pnand %p427_p1, %p202_p2  ;;  %s192_s29 = sshll.u32 %s191_s26, 4  ;;  %s193_s29 = int_to_ptr.hbm [resolvable:$true] %s192_s29 }
  0x2b   : > { %s194_s19 = sshll.u32 %s184_s15, 4  ;;  %s195_s19 = int_to_ptr.vmem [resolvable:$true] %s194_s19 }
  0x2c   : > { %s167_s14 = scalar_lea.hbm %s960_s3, %s422_s10  ;;  %206 = sbr.rel (%p203_p3) target bundleno = 79 (0x4f), region = 28 }
  0x2d   : > { %s168_s20 = sshll.u32 %s167_s14, 4  ;;  %s181_s14 = scalar_lea.sflag [#allocation10], %s852_s22  ;;  %s169_s20 = int_to_ptr.hbm [resolvable:$true] %s168_s20 }
  0x2e   : > { %446 = dma.hbm_to_vmem [thread:$0]  (!%p862_p0), %s169_s20, 512, %s171_s28, %s157_s13, %s732_s12, %s732_s12, %s733_s27  }
  0x2f   : > { %449 = dma.hbm_to_vmem [thread:$0]  (!%p862_p0), %s193_s29, 512, %s195_s19, %s181_s14, %s732_s12, %s732_s12, %s733_s27  }
  0x30   : > { %s881_s3 = sand.u32 (!%p203_p3), 1, %s703_s1  }
  0x31   : > { %s884_s13 = sshll.u32 %s881_s3, 5  ;;  %s209_s28 = scalar_lea.sflag [#allocation7], %s881_s3 }
  0x32   : > { %s212_s10 = scalar_lea.vmem [#allocation6], %s884_s13 }
  0x33   : > { %686 = dma.done.wait (%p836_p8), %s209_s28, 512  }
  0x34   : > { %688 = vsyncadd (%p836_p8), %s209_s28, 4294966784  ;;  %s219_s12 = scalar_lea.sflag [#allocation10], %s881_s3  ;;  %s222_s22 = scalar_lea.vmem [#allocation9], %s884_s13 }
  0x35   : > { %690 = dma.done.wait (%p836_p8), %s219_s12, 512  }
  0x36   : > { %692 = vsyncadd (%p836_p8), %s219_s12, 4294966784  ;;  %s252_s24 = sld [smem:[#allocation5 + %s715_s2]]  ;;  %s432_s11 = sshll.u32 %s711_s6, 2  ;;  %v255_v0 = vld [vmem:[%s212_s10] sm:$0xff]  ;;  %v256_v2 = vld [vmem:[%s212_s10 + $0x8] sm:$0xff] }
  0x37   : > { %s433_s20 = sshll.u32 %s715_s2, 3  ;;  %v259_v1 = vld [vmem:[%s222_s22] sm:$0xff]  ;;  %v257_v3 = vld [vmem:[%s212_s10 + $0x10] sm:$0xff]  ;;  %v260_v4 = vld [vmem:[%s222_s22 + $0x8] sm:$0xff]  ;;  %s248_s29 = scalar_lea.vmem [#allocation11], %s884_s13 }
  0x38   : > { %s293_s25 = sadd.s32 %s433_s20, %s432_s11  ;;  %v261_v5 = vld [vmem:[%s222_s22 + $0x10] sm:$0xff]  ;;  %v258_v6 = vld [vmem:[%s212_s10 + $0x18] sm:$0xff]  ;;  %s296_s15 = sshll.u32 %s248_s29, 4  ;;  %s297_s15 = int_to_ptr.vmem [resolvable:$true] %s296_s15 }
  0x39   : > { %s434_s26 = sshll.u32 %s293_s25, 3  ;;  %v262_v8 = vld [vmem:[%s222_s22 + $0x18] sm:$0xff]  ;;  %s282_s14 = scalar_lea.sflag [#allocation8], %s881_s3 }
  0x3a   : > { %s295_s17 = scalar_lea.hbm %s947_s5, %s434_s26  ;;  %s643_s22 = scalar_lea.hbm %s947_s5, 128 }
  0x3b   : > { %s298_s19 = sshll.u32 %s295_s17, 4  ;;  %s299_s19 = int_to_ptr.hbm [resolvable:$true] %s298_s19 }
  0x3c   : > { %s253_s27 = sld [smem:[#allocation3 + %s252_s24]]  ;;  %s637_s28 = sshra.s32 %s299_s19, 4  ;;  %s638_s28 = int_to_ptr.hbm [resolvable:$true] %s637_s28 }
  0x3d   : > { %s254_s16 = sld [smem:[#allocation4 + %s252_s24]]  ;;  %s639_s10 = scalar_lea.hbm %s638_s28, 32 }
  0x3e   : > { %p640_p4 = scmp.ne.s32.totalorder %s638_s28, %s639_s10  ;;  %p644_p7 = scmp.lt.s32.totalorder %s638_s28, %s947_s5 }
  0x3f   : > { %p645_p8 = scmp.lt.s32.totalorder %s643_s22, %s639_s10 }
  0x40   : > { %p641_p5 = pnand %p640_p4, %p840_p9 }
  0x41   : > { %p646_p10 = por %p645_p8, %p644_p7 }
  0x42   : > { %v263_v7 = vstv %s253_s27  ;;  %p642_p6 = pneg %p641_p5 }
  0x43   : > { %v264_v9 = vmul.f32 %v263_v7, %v255_v0  ;;  %v268_v10 = vstv %s254_s16  ;;  %v265_v11 = vmul.f32 %v263_v7, %v256_v2  ;;  %v266_v12 = vmul.f32 %v263_v7, %v257_v3 }
  0x44   : > { %v269_v13 = vmul.f32 %v268_v10, %v259_v1  ;;  %v270_v14 = vmul.f32 %v268_v10, %v260_v4  ;;  %v271_v15 = vmul.f32 %v268_v10, %v261_v5  ;;  %v267_v16 = vmul.f32 %v263_v7, %v258_v6  ;;  %p647_p11 = pnand %p646_p10, %p642_p6 }
  0x45   : > { %v272_v17 = vmul.f32 %v268_v10, %v262_v8 }
  0x46   : > { %v273_v18 = vadd.f32 %v269_v13, %v264_v9  ;;  %v274_v19 = vadd.f32 %v270_v14, %v265_v11  ;;  %v275_v20 = vadd.f32 %v271_v15, %v266_v12 }
  0x47   : > { %v276_v21 = vadd.f32 %v272_v17, %v267_v16 }
  0x48   : > { %277 = vst [vmem:[%s248_s29] sm:$0xff] %v273_v18 }
  0x49   : > { %278 = vst [vmem:[%s248_s29 + $0x8] sm:$0xff] %v274_v19 }
  0x4a   : > { %279 = vst [vmem:[%s248_s29 + $0x10] sm:$0xff] %v275_v20 }
  0x4b   : > { %280 = vst [vmem:[%s248_s29 + $0x18] sm:$0xff] %v276_v21 }
  0x4c   : > { %650 = shalt.err (!%p647_p11)
}
  0x4d   : > { %s734_s3 = smov 128   ;;  %s735_s20 = smov 8  }
  0x4e   : > { %441 = dma.vmem_to_hbm [thread:$0]  (%p840_p9), %s297_s15, 512, %s299_s19, %s282_s14, %s734_s3, %s734_s3, %s735_s20  }
  0x4f PF: > { %p455_p13 = scmp.ge.s32.totalorder %s727_s9, 2  ;;  %s313_s27 = sand.u32 1, %s699_s0  }
  0x50   : > { %s314_s16 = scalar_lea.sflag [#allocation8], %s313_s27 }
  0x51   : > { %p451_p0 = pnand %p455_p13, %p846_p12 }
  0x53   : > { %p452_p1 = pneg %p451_p0 }
  0x55   : > { %694 = dma.done.wait (%p452_p1), %s314_s16, 512  }
  0x56   : > { %696 = vsyncadd (%p452_p1), %s314_s16, 4294966784  ;;  %s42_s9 = sadd.s32 1, %s727_s9   ;;  %s961_s18 = sld [smem:[#allocation16_spill]] }
  0x57   : > { %p39_p2 = scmp.ge.s32.totalorder %s42_s9, 6   ;;  %s962_s25 = sld [smem:[#allocation17_spill]] }
  0x58   : > { %s963_s0 = smov %s703_s1  ;;  %s964_s1 = smov %s707_s30 }
  0x59   : > { %s965_s30 = smov %s855_s23  ;;  %s966_s6 = smov %s719_s7 }
  0x5a   : > { %s967_s2 = smov %s723_s8  ;;  %41 = sbr.rel (!%p39_p2) target bundleno = 19 (0x13), region = 86 }
  0x5c   : > { %s968_s7 = smov %s961_s18 }
  0x5d   : > { %s969_s8 = smov %s962_s25 }
  0x5f   :  { %320 = vsyncpa [#allocation7], 1 }
  0x60   :  { %322 = vsyncpa [#allocation7 + $0x1], 1 }
  0x61   :  { %323 = vsyncpa [#allocation10], 1 }
  0x62   :  { %325 = vsyncpa [#allocation10 + $0x1], 1 }
  0x63   :  { %326 = vsyncpa [#allocation8], 1 }
  0x64   :  { %328 = vsyncpa [#allocation8 + $0x1], 1 }

</bundles_post_ra>
